<compile_context>
chip_gen: v6e
topology: v6e:2x2x1
jax: 0.10.0
libtpu: 0.0.40
codegen_flags: <defaults>
</compile_context>

<pallas_src>
import functools
import math

import jax
import jax.numpy as jnp
from jax import lax
from jax.experimental import pallas as pl
from jax.experimental.pallas import tpu as pltpu

SMOOTH_NR = 1e-6
SMOOTH_DR = 1e-6

_LANE = 128
# Sublane packing granule legal for f32 (8,128), bf16 (16,128) and int8 (32,128).
_GRANULE = 32 * _LANE       # 4096 spatial voxels
_CHUNK_ROWS = 512           # in-kernel compute chunk (rows of 128 lanes)


def _dice_ce_stats_kernel(pred_ref, lab_ref, out_ref, *, chunk_rows, masked):
    # pred_ref: (C, TR, 128) logits (original dtype), lane-dense spatial layout
    # lab_ref:  (1, TR, 128) integer labels (int8 when C <= 127); -1 = padded voxel
    # out_ref:  (NR, 128) float32 partial sums, resident across grid axis 2:
    #           rows [0:C)=intersection, [C:2C)=target sum, [2C:3C)=pred sum,
    #           row 3C = CE sum, remaining rows = zero padding (NR is a
    #           multiple of 8 so the accumulate is a fully packed slab).
    s = pl.program_id(2)

    @pl.when(s == 0)
    def _():
        out_ref[...] = jnp.zeros_like(out_ref)

    C = pred_ref.shape[0]
    tr = pred_ref.shape[1]
    n_chunks = tr // chunk_rows
    zero_row = jnp.zeros((1, _LANE), jnp.float32)
    onef = jnp.float32(1.0)
    zerof = jnp.float32(0.0)

    def body(i, carry):
        inter, tsum, psum, ce = carry
        r0 = pl.multiple_of(i * chunk_rows, chunk_rows)
        labels = lab_ref[0, pl.ds(r0, chunk_rows), :].astype(jnp.int32)
        logit = [pred_ref[c, pl.ds(r0, chunk_rows), :].astype(jnp.float32)
                 for c in range(C)]

        # Channel softmax: channel axis is unrolled in Python, so max / sum
        # over it are elementwise VPU ops over fully packed (chunk,128) planes.
        m = logit[0]
        for c in range(1, C):
            m = jnp.maximum(m, logit[c])
        e = [jnp.exp(logit[c] - m) for c in range(C)]
        se = e[0]
        for c in range(1, C):
            se = se + e[c]
        inv_se = pl.reciprocal(se)          # exact; EUP slot
        lse = m + jnp.log(se)

        if masked:
            valid = labels >= 0
            # Zeroing the reciprocal zeroes every probs_c for padded voxels,
            # so inter/psum exclude them with a single select per voxel.
            inv_se = jnp.where(valid, inv_se, zerof)

        # TODO(synk): PyTorch CrossEntropyLoss ignore_index (e.g. -100)
        # semantics are not reproduced for user-provided out-of-range labels.
        lt = jnp.zeros_like(se)             # logit of the true class
        new_inter, new_tsum, new_psum = [], [], []
        for c in range(C):
            mask_c = labels == c
            probs_c = e[c] * inv_se
            new_psum.append(psum[c] +
                            jnp.sum(probs_c, axis=0, keepdims=True))
            new_inter.append(inter[c] +
                             jnp.sum(jnp.where(mask_c, probs_c, zerof),
                                     axis=0, keepdims=True))
            new_tsum.append(tsum[c] +
                            jnp.sum(jnp.where(mask_c, onef, zerof),
                                    axis=0, keepdims=True))
            lt = jnp.where(mask_c, logit[c], lt)

        ce_vox = lse - lt
        if masked:
            ce_vox = jnp.where(valid, ce_vox, zerof)
        new_ce = ce + jnp.sum(ce_vox, axis=0, keepdims=True)
        return (tuple(new_inter), tuple(new_tsum), tuple(new_psum), new_ce)

    init = ((zero_row,) * C, (zero_row,) * C, (zero_row,) * C, zero_row)
    inter, tsum, psum, ce = lax.fori_loop(0, n_chunks, body, init)

    # One packed full-slab accumulate per grid step (unmasked stores).
    rows = list(inter) + list(tsum) + list(psum) + [ce]
    pad_rows = out_ref.shape[0] - len(rows)
    if pad_rows:
        rows.append(jnp.zeros((pad_rows, _LANE), jnp.float32))
    out_ref[...] = out_ref[...] + jnp.concatenate(rows, axis=0)


def _guess_num_tensorcores() -> int:
    """Best-effort TensorCores-per-chip guess; falls back to 1."""
    try:
        dev = jax.devices()[0]
        for attr in ("num_cores", "core_count"):
            v = getattr(dev, attr, None)
            if v:
                return max(1, min(int(v), 2))
    except Exception:
        pass
    return 1


def _default_vmem_limit_bytes() -> int:
    cap = 128 << 20
    try:
        cap = int(getattr(pltpu.get_tpu_info(), "vmem_capacity_bytes", cap))
    except Exception:
        pass
    # Leave headroom for compiler scratch; never request the full physical VMEM.
    return int(max(32 << 20, min(cap - (16 << 20), 100 << 20)))


@functools.partial(
    jax.jit,
    static_argnames=("include_background", "tile_s", "num_spatial_splits"))
def dice_ce_loss(y_pred, y_true, *, include_background: bool = False,
                 tile_s: int = 512 * 1024, num_spatial_splits=None):
    """Equivalent of DiceCELoss(to_onehot_y=True, use_softmax=True,
    layout='NCDHW', include_background=False).forward(y_pred, y_true).

    Callers should supply bf16 logits where possible (the kernel casts to f32
    per chunk); f32 logits double the bytes on the HBM-bound path (v5e/v6e).
    """
    N, C = y_pred.shape[0], y_pred.shape[1]
    S = 1
    for d in y_pred.shape[2:]:
        S *= d

    lab_dtype = jnp.int8 if C <= 127 else jnp.int32
    pred_flat = y_pred.reshape(N, C, S)
    lab_flat = y_true.reshape(N, 1, S).astype(lab_dtype)

    needs_pad = (S % _GRANULE) != 0
    if needs_pad:
        # TODO(synk): wrapper-side padding costs one extra HBM pass over the
        # inputs; only hit when S is not a multiple of 4096.
        s_pad = ((S + _GRANULE - 1) // _GRANULE) * _GRANULE
        pred_flat = jnp.pad(pred_flat, ((0, 0), (0, 0), (0, s_pad - S)))
        lab_flat = jnp.pad(lab_flat, ((0, 0), (0, 0), (0, s_pad - S)),
                           constant_values=-1)
    else:
        s_pad = S

    R = s_pad // _LANE
    pred4 = pred_flat.reshape(N, C, R, _LANE)   # lane-dense, free reshape
    lab4 = lab_flat.reshape(N, 1, R, _LANE)

    vmem_limit = _default_vmem_limit_bytes()

    # Tile: largest multiple of the 4096-voxel granule dividing the (padded)
    # spatial size, capped by tile_s and by ~half the VMEM budget for the
    # double-buffered inputs (compute temporaries are bounded by the in-kernel
    # chunk loop, not the tile size).
    bytes_per_voxel = (C * jnp.dtype(y_pred.dtype).itemsize
                       + jnp.dtype(lab_dtype).itemsize)
    cap_vox = int((vmem_limit // 2) // (2 * bytes_per_voxel))
    tile_cap = max(_GRANULE, (cap_vox // _GRANULE) * _GRANULE)
    tile_s_eff = max(_GRANULE, min(tile_s, tile_cap))

    n_gran = s_pad // _GRANULE
    g_per_tile = max(1, min(tile_s_eff // _GRANULE, n_gran))
    while n_gran % g_per_tile:
        g_per_tile -= 1
    ts = g_per_tile * _GRANULE
    tr = ts // _LANE
    n_tiles = s_pad // ts

    # In-kernel compute chunk: largest 32-row-aligned divisor of tr <= 512.
    cr = max(d for d in range(32, min(_CHUNK_ROWS, tr) + 1, 32) if tr % d == 0)

    # Optional coarse spatial split (extra *parallel* grid axis): keeps both
    # v7x TensorCores busy when N alone can't; resolves to 1 on single-TC chips.
    if num_spatial_splits is None:
        splits = 1 if N % 2 == 0 else _guess_num_tensorcores()
    else:
        splits = max(1, int(num_spatial_splits))
    n_splits = math.gcd(splits, n_tiles)
    tps = n_tiles // n_splits       # spatial tiles per split

    n_stat_rows = ((3 * C + 1 + 7) // 8) * 8   # inter | tsum | psum | ce | pad

    kernel = functools.partial(_dice_ce_stats_kernel,
                               chunk_rows=cr, masked=needs_pad)

    stats = pl.pallas_call(
        kernel,
        out_shape=jax.ShapeDtypeStruct((N, n_splits, n_stat_rows, _LANE),
                                       jnp.float32),
        grid_spec=pltpu.PrefetchScalarGridSpec(
            num_scalar_prefetch=0,
            grid=(N, n_splits, tps),
            in_specs=[
                pl.BlockSpec((None, C, tr, _LANE),
                             lambda n, sp, s: (n, 0, sp * tps + s, 0)),
                pl.BlockSpec((None, 1, tr, _LANE),
                             lambda n, sp, s: (n, 0, sp * tps + s, 0)),
            ],
            out_specs=pl.BlockSpec((None, None, n_stat_rows, _LANE),
                                   lambda n, sp, s: (n, sp, 0, 0)),
        ),
        compiler_params=pltpu.CompilerParams(
            dimension_semantics=("parallel", "parallel", "arbitrary"),
            vmem_limit_bytes=vmem_limit),
    )(pred4, lab4)

    # Tiny epilogue: finish the 128-lane partials and the split axis.
    inter = jnp.sum(stats[:, :, 0:C, :], axis=(1, 3))          # (N, C)
    tsum = jnp.sum(stats[:, :, C:2 * C, :], axis=(1, 3))       # (N, C)
    psum = jnp.sum(stats[:, :, 2 * C:3 * C, :], axis=(1, 3))   # (N, C)
    ce_sum = jnp.sum(stats[:, :, 3 * C, :], axis=(1, 2))       # (N,)

    if not include_background:
        inter, tsum, psum = inter[:, 1:], tsum[:, 1:], psum[:, 1:]

    dice = (2.0 * inter + SMOOTH_NR) / (tsum + psum + SMOOTH_DR)
    dice_loss = jnp.mean(1.0 - dice)
    cross_entropy = jnp.sum(ce_sum) / (N * S)    # true (unpadded) voxel count
    return (dice_loss + cross_entropy) / 2.0


def dice_ce_loss_ref(y_pred, y_true):
    """Pure-JAX reference matching the PyTorch module semantics."""
    N, C = y_pred.shape[0], y_pred.shape[1]
    labels = jnp.squeeze(y_true, axis=1).astype(jnp.int32)       # (N, D, H, W)
    logp = jax.nn.log_softmax(y_pred.astype(jnp.float32), axis=1)
    onehot = jax.nn.one_hot(labels, C, axis=1, dtype=jnp.float32)
    ce = -jnp.mean(jnp.sum(onehot * logp, axis=1))
    probs = jax.nn.softmax(y_pred.astype(jnp.float32), axis=1)
    red = tuple(range(2, y_pred.ndim))
    inter = jnp.sum(onehot * probs, axis=red)[:, 1:]
    tsum = jnp.sum(onehot, axis=red)[:, 1:]
    psum = jnp.sum(probs, axis=red)[:, 1:]
    dice = (2.0 * inter + SMOOTH_NR) / (tsum + psum + SMOOTH_DR)
    return (jnp.mean(1.0 - dice) + ce) / 2.0


if __name__ == "__main__":
    # DiceCELoss(to_onehot_y=True, use_softmax=True, layout='NCDHW',
    #            include_background=False, num_classes=4)
    # No learnable parameters (CrossEntropyLoss with default weights).
    key = jax.random.PRNGKey(0)
    kp, kt = jax.random.split(key)
    N, C, D, H, W = 2, 4, 16, 16, 16
    y_pred = jax.random.normal(kp, (N, C, D, H, W), dtype=jnp.float32)
    y_true = jax.random.randint(kt, (N, 1, D, H, W), 0, C, dtype=jnp.int32)

    loss = jax.block_until_ready(dice_ce_loss(y_pred, y_true))
    loss_ref = jax.block_until_ready(dice_ce_loss_ref(y_pred, y_true))
    assert jnp.allclose(loss, loss_ref, rtol=1e-5, atol=1e-5), (loss, loss_ref)

    # Also exercise the padded / masked path (S not a multiple of 4096).
    kp2, kt2 = jax.random.split(kt)
    N2, D2, H2, W2 = 1, 13, 11, 9
    y_pred2 = jax.random.normal(kp2, (N2, C, D2, H2, W2), dtype=jnp.float32)
    y_true2 = jax.random.randint(kt2, (N2, 1, D2, H2, W2), 0, C, dtype=jnp.int32)
    loss2 = jax.block_until_ready(dice_ce_loss(y_pred2, y_true2))
    loss2_ref = jax.block_until_ready(dice_ce_loss_ref(y_pred2, y_true2))
    assert jnp.allclose(loss2, loss2_ref, rtol=1e-5, atol=1e-5), (loss2, loss2_ref)

    print("KERNEL_OK")
</pallas_src>

<mosaic_0001>
module attributes {stable_mosaic.version = 11 : i64} {
  func.func @_dice_ce_stats_kernel(%arg0: i32, %arg1: i32, %arg2: i32, %arg3: memref<1x4x32x128xf32, #tpu.memory_space<vmem>>, %arg4: memref<1x1x32x128xi8, #tpu.memory_space<vmem>>, %arg5: memref<1x1x16x128xf32, #tpu.memory_space<vmem>>) attributes {dimension_semantics = [#tpu.dimension_semantics<parallel>, #tpu.dimension_semantics<parallel>, #tpu.dimension_semantics<arbitrary>], iteration_bounds = array<i64: 2, 1, 1>, scalar_prefetch = 0 : i64, scratch_operands = 0 : i64, tpu.core_type = #tpu.core_type<tc>, window_params = [{transform_indices = @transform_0, window_bounds = array<i64: 1, 4, 32, 128>}, {transform_indices = @transform_1, window_bounds = array<i64: 1, 1, 32, 128>}, {transform_indices = @transform_2, window_bounds = array<i64: 1, 1, 16, 128>}]} {
    %c0_i32 = arith.constant 0 : i32
    %0 = arith.cmpi eq, %arg2, %c0_i32 : i32
    %1 = arith.extui %0 : i1 to i32
    %c0_i32_0 = arith.constant 0 : i32
    %2 = arith.cmpi ne, %1, %c0_i32_0 : i32
    scf.if %2 {
      %cst_40 = arith.constant 0.000000e+00 : f32
      %124 = vector.broadcast %cst_40 : f32 to vector<16x128xf32>
      %c0_41 = arith.constant 0 : index
      %c0_42 = arith.constant 0 : index
      %c0_43 = arith.constant 0 : index
      %c0_44 = arith.constant 0 : index
      %125 = vector.load %arg5[%c0_41, %c0_42, %c0_43, %c0_44] : memref<1x1x16x128xf32, #tpu.memory_space<vmem>>, vector<1x1x16x128xf32>
      %126 = vector.shape_cast %125 : vector<1x1x16x128xf32> to vector<16x128xf32>
      %127 = vector.shape_cast %124 : vector<16x128xf32> to vector<1x1x16x128xf32>
      tpu.vector_store %arg5[%c0_41, %c0_42, %c0_43, %c0_44], %127 {strides = array<i32>} : memref<1x1x16x128xf32, #tpu.memory_space<vmem>>, vector<1x1x16x128xf32>,
    } else {
    }
    %cst = arith.constant 0.000000e+00 : f32
    %3 = vector.broadcast %cst : f32 to vector<1x128xf32>
    %cst_1 = arith.constant 0.000000e+00 : f32
    %cst_2 = arith.constant 1.000000e+00 : f32
    %c0_i32_3 = arith.constant 0 : i32
    %c32_i32 = arith.constant 32 : i32
    %4 = arith.muli %c0_i32_3, %c32_i32 : i32
    %5 = tpu.assume_multiple %4, 32 : i32
    %c0 = arith.constant 0 : index
    %c0_4 = arith.constant 0 : index
    %6 = arith.index_cast %5 : i32 to index
    %c0_5 = arith.constant 0 : index
    %7 = vector.load %arg4[%c0, %c0_4, %6, %c0_5] : memref<1x1x32x128xi8, #tpu.memory_space<vmem>>, vector<1x1x32x128xi8>
    %8 = vector.shape_cast %7 : vector<1x1x32x128xi8> to vector<32x128xi8>
    %9 = arith.extsi %8 : vector<32x128xi8> to vector<32x128xi32>
    %c0_6 = arith.constant 0 : index
    %c0_7 = arith.constant 0 : index
    %10 = arith.index_cast %5 : i32 to index
    %c0_8 = arith.constant 0 : index
    %11 = vector.load %arg3[%c0_6, %c0_7, %10, %c0_8] : memref<1x4x32x128xf32, #tpu.memory_space<vmem>>, vector<1x1x32x128xf32>
    %12 = vector.shape_cast %11 : vector<1x1x32x128xf32> to vector<32x128xf32>
    %c0_9 = arith.constant 0 : index
    %c1 = arith.constant 1 : index
    %13 = arith.index_cast %5 : i32 to index
    %c0_10 = arith.constant 0 : index
    %14 = vector.load %arg3[%c0_9, %c1, %13, %c0_10] : memref<1x4x32x128xf32, #tpu.memory_space<vmem>>, vector<1x1x32x128xf32>
    %15 = vector.shape_cast %14 : vector<1x1x32x128xf32> to vector<32x128xf32>
    %c0_11 = arith.constant 0 : index
    %c2 = arith.constant 2 : index
    %16 = arith.index_cast %5 : i32 to index
    %c0_12 = arith.constant 0 : index
    %17 = vector.load %arg3[%c0_11, %c2, %16, %c0_12] : memref<1x4x32x128xf32, #tpu.memory_space<vmem>>, vector<1x1x32x128xf32>
    %18 = vector.shape_cast %17 : vector<1x1x32x128xf32> to vector<32x128xf32>
    %c0_13 = arith.constant 0 : index
    %c3 = arith.constant 3 : index
    %19 = arith.index_cast %5 : i32 to index
    %c0_14 = arith.constant 0 : index
    %20 = vector.load %arg3[%c0_13, %c3, %19, %c0_14] : memref<1x4x32x128xf32, #tpu.memory_space<vmem>>, vector<1x1x32x128xf32>
    %21 = vector.shape_cast %20 : vector<1x1x32x128xf32> to vector<32x128xf32>
    %22 = arith.maximumf %12, %15 : vector<32x128xf32>
    %23 = arith.maximumf %22, %18 : vector<32x128xf32>
    %24 = arith.maximumf %23, %21 : vector<32x128xf32>
    %25 = arith.subf %12, %24 : vector<32x128xf32>
    %26 = math.exp %25 : vector<32x128xf32>
    %27 = arith.subf %15, %24 : vector<32x128xf32>
    %28 = math.exp %27 : vector<32x128xf32>
    %29 = arith.subf %18, %24 : vector<32x128xf32>
    %30 = math.exp %29 : vector<32x128xf32>
    %31 = arith.subf %21, %24 : vector<32x128xf32>
    %32 = math.exp %31 : vector<32x128xf32>
    %33 = arith.addf %26, %28 : vector<32x128xf32>
    %34 = arith.addf %33, %30 : vector<32x128xf32>
    %35 = arith.addf %34, %32 : vector<32x128xf32>
    %36 = tpu.reciprocal %35 : vector<32x128xf32> -> vector<32x128xf32>
    %37 = math.log %35 : vector<32x128xf32>
    %38 = arith.addf %24, %37 : vector<32x128xf32>
    %cst_15 = arith.constant 0.000000e+00 : f32
    %39 = vector.broadcast %cst_15 : f32 to vector<32x128xf32>
    %c0_i32_16 = arith.constant 0 : i32
    %40 = vector.broadcast %c0_i32_16 : i32 to vector<32x128xi32>
    %41 = arith.cmpi eq, %9, %40 : vector<32x128xi32>
    %42 = arith.mulf %26, %36 : vector<32x128xf32>
    %cst_17 = arith.constant dense<0.000000e+00> : vector<128xf32>
    %43 = vector.multi_reduction <add>, %42, %cst_17 [0] : vector<32x128xf32> to vector<128xf32>
    %44 = vector.shape_cast %43 : vector<128xf32> to vector<1x128xf32>
    %45 = arith.addf %3, %44 : vector<1x128xf32>
    %46 = vector.broadcast %cst_1 : f32 to vector<32x128xf32>
    %47 = arith.select %41, %42, %46 : vector<32x128xi1>, vector<32x128xf32>
    %cst_18 = arith.constant dense<0.000000e+00> : vector<128xf32>
    %48 = vector.multi_reduction <add>, %47, %cst_18 [0] : vector<32x128xf32> to vector<128xf32>
    %49 = vector.shape_cast %48 : vector<128xf32> to vector<1x128xf32>
    %50 = arith.addf %3, %49 : vector<1x128xf32>
    %51 = vector.broadcast %cst_2 : f32 to vector<32x128xf32>
    %52 = vector.broadcast %cst_1 : f32 to vector<32x128xf32>
    %53 = arith.select %41, %51, %52 : vector<32x128xi1>, vector<32x128xf32>
    %cst_19 = arith.constant dense<0.000000e+00> : vector<128xf32>
    %54 = vector.multi_reduction <add>, %53, %cst_19 [0] : vector<32x128xf32> to vector<128xf32>
    %55 = vector.shape_cast %54 : vector<128xf32> to vector<1x128xf32>
    %56 = arith.addf %3, %55 : vector<1x128xf32>
    %57 = arith.select %41, %12, %39 : vector<32x128xi1>, vector<32x128xf32>
    %c1_i32 = arith.constant 1 : i32
    %58 = vector.broadcast %c1_i32 : i32 to vector<32x128xi32>
    %59 = arith.cmpi eq, %9, %58 : vector<32x128xi32>
    %60 = arith.mulf %28, %36 : vector<32x128xf32>
    %cst_20 = arith.constant dense<0.000000e+00> : vector<128xf32>
    %61 = vector.multi_reduction <add>, %60, %cst_20 [0] : vector<32x128xf32> to vector<128xf32>
    %62 = vector.shape_cast %61 : vector<128xf32> to vector<1x128xf32>
    %63 = arith.addf %3, %62 : vector<1x128xf32>
    %64 = vector.broadcast %cst_1 : f32 to vector<32x128xf32>
    %65 = arith.select %59, %60, %64 : vector<32x128xi1>, vector<32x128xf32>
    %cst_21 = arith.constant dense<0.000000e+00> : vector<128xf32>
    %66 = vector.multi_reduction <add>, %65, %cst_21 [0] : vector<32x128xf32> to vector<128xf32>
    %67 = vector.shape_cast %66 : vector<128xf32> to vector<1x128xf32>
    %68 = arith.addf %3, %67 : vector<1x128xf32>
    %69 = vector.broadcast %cst_2 : f32 to vector<32x128xf32>
    %70 = vector.broadcast %cst_1 : f32 to vector<32x128xf32>
    %71 = arith.select %59, %69, %70 : vector<32x128xi1>, vector<32x128xf32>
    %cst_22 = arith.constant dense<0.000000e+00> : vector<128xf32>
    %72 = vector.multi_reduction <add>, %71, %cst_22 [0] : vector<32x128xf32> to vector<128xf32>
    %73 = vector.shape_cast %72 : vector<128xf32> to vector<1x128xf32>
    %74 = arith.addf %3, %73 : vector<1x128xf32>
    %75 = arith.select %59, %15, %57 : vector<32x128xi1>, vector<32x128xf32>
    %c2_i32 = arith.constant 2 : i32
    %76 = vector.broadcast %c2_i32 : i32 to vector<32x128xi32>
    %77 = arith.cmpi eq, %9, %76 : vector<32x128xi32>
    %78 = arith.mulf %30, %36 : vector<32x128xf32>
    %cst_23 = arith.constant dense<0.000000e+00> : vector<128xf32>
    %79 = vector.multi_reduction <add>, %78, %cst_23 [0] : vector<32x128xf32> to vector<128xf32>
    %80 = vector.shape_cast %79 : vector<128xf32> to vector<1x128xf32>
    %81 = arith.addf %3, %80 : vector<1x128xf32>
    %82 = vector.broadcast %cst_1 : f32 to vector<32x128xf32>
    %83 = arith.select %77, %78, %82 : vector<32x128xi1>, vector<32x128xf32>
    %cst_24 = arith.constant dense<0.000000e+00> : vector<128xf32>
    %84 = vector.multi_reduction <add>, %83, %cst_24 [0] : vector<32x128xf32> to vector<128xf32>
    %85 = vector.shape_cast %84 : vector<128xf32> to vector<1x128xf32>
    %86 = arith.addf %3, %85 : vector<1x128xf32>
    %87 = vector.broadcast %cst_2 : f32 to vector<32x128xf32>
    %88 = vector.broadcast %cst_1 : f32 to vector<32x128xf32>
    %89 = arith.select %77, %87, %88 : vector<32x128xi1>, vector<32x128xf32>
    %cst_25 = arith.constant dense<0.000000e+00> : vector<128xf32>
    %90 = vector.multi_reduction <add>, %89, %cst_25 [0] : vector<32x128xf32> to vector<128xf32>
    %91 = vector.shape_cast %90 : vector<128xf32> to vector<1x128xf32>
    %92 = arith.addf %3, %91 : vector<1x128xf32>
    %93 = arith.select %77, %18, %75 : vector<32x128xi1>, vector<32x128xf32>
    %c3_i32 = arith.constant 3 : i32
    %94 = vector.broadcast %c3_i32 : i32 to vector<32x128xi32>
    %95 = arith.cmpi eq, %9, %94 : vector<32x128xi32>
    %96 = arith.mulf %32, %36 : vector<32x128xf32>
    %cst_26 = arith.constant dense<0.000000e+00> : vector<128xf32>
    %97 = vector.multi_reduction <add>, %96, %cst_26 [0] : vector<32x128xf32> to vector<128xf32>
    %98 = vector.shape_cast %97 : vector<128xf32> to vector<1x128xf32>
    %99 = arith.addf %3, %98 : vector<1x128xf32>
    %100 = vector.broadcast %cst_1 : f32 to vector<32x128xf32>
    %101 = arith.select %95, %96, %100 : vector<32x128xi1>, vector<32x128xf32>
    %cst_27 = arith.constant dense<0.000000e+00> : vector<128xf32>
    %102 = vector.multi_reduction <add>, %101, %cst_27 [0] : vector<32x128xf32> to vector<128xf32>
    %103 = vector.shape_cast %102 : vector<128xf32> to vector<1x128xf32>
    %104 = arith.addf %3, %103 : vector<1x128xf32>
    %105 = vector.broadcast %cst_2 : f32 to vector<32x128xf32>
    %106 = vector.broadcast %cst_1 : f32 to vector<32x128xf32>
    %107 = arith.select %95, %105, %106 : vector<32x128xi1>, vector<32x128xf32>
    %cst_28 = arith.constant dense<0.000000e+00> : vector<128xf32>
    %108 = vector.multi_reduction <add>, %107, %cst_28 [0] : vector<32x128xf32> to vector<128xf32>
    %109 = vector.shape_cast %108 : vector<128xf32> to vector<1x128xf32>
    %110 = arith.addf %3, %109 : vector<1x128xf32>
    %111 = arith.select %95, %21, %93 : vector<32x128xi1>, vector<32x128xf32>
    %112 = arith.subf %38, %111 : vector<32x128xf32>
    %cst_29 = arith.constant dense<0.000000e+00> : vector<128xf32>
    %113 = vector.multi_reduction <add>, %112, %cst_29 [0] : vector<32x128xf32> to vector<128xf32>
    %114 = vector.shape_cast %113 : vector<128xf32> to vector<1x128xf32>
    %115 = arith.addf %3, %114 : vector<1x128xf32>
    %c1_i32_30 = arith.constant 1 : i32
    %cst_31 = arith.constant 0.000000e+00 : f32
    %116 = vector.broadcast %cst_31 : f32 to vector<3x128xf32>
    %c0_32 = arith.constant 0 : index
    %c0_33 = arith.constant 0 : index
    %c0_34 = arith.constant 0 : index
    %c0_35 = arith.constant 0 : index
    %117 = vector.load %arg5[%c0_32, %c0_33, %c0_34, %c0_35] : memref<1x1x16x128xf32, #tpu.memory_space<vmem>>, vector<1x1x16x128xf32>
    %118 = vector.shape_cast %117 : vector<1x1x16x128xf32> to vector<16x128xf32>
    %119 = tpu.concatenate %50, %68, %86, %104, %56, %74, %92, %110, %45, %63, %81, %99, %115, %116 in 0 : vector<1x128xf32>, vector<1x128xf32>, vector<1x128xf32>, vector<1x128xf32>, vector<1x128xf32>, vector<1x128xf32>, vector<1x128xf32>, vector<1x128xf32>, vector<1x128xf32>, vector<1x128xf32>, vector<1x128xf32>, vector<1x128xf32>, vector<1x128xf32>, vector<3x128xf32> -> vector<16x128xf32>
    %120 = arith.addf %118, %119 : vector<16x128xf32>
    %c0_36 = arith.constant 0 : index
    %c0_37 = arith.constant 0 : index
    %c0_38 = arith.constant 0 : index
    %c0_39 = arith.constant 0 : index
    %121 = vector.load %arg5[%c0_36, %c0_37, %c0_38, %c0_39] : memref<1x1x16x128xf32, #tpu.memory_space<vmem>>, vector<1x1x16x128xf32>
    %122 = vector.shape_cast %121 : vector<1x1x16x128xf32> to vector<16x128xf32>
    %123 = vector.shape_cast %120 : vector<16x128xf32> to vector<1x1x16x128xf32>
    tpu.vector_store %arg5[%c0_36, %c0_37, %c0_38, %c0_39], %123 {strides = array<i32>} : memref<1x1x16x128xf32, #tpu.memory_space<vmem>>, vector<1x1x16x128xf32>,
    return
  }
  func.func @transform_0(%arg0: i32, %arg1: i32, %arg2: i32) -> (i32, i32, i32, i32) {
    %c1_i32 = arith.constant 1 : i32
    %0 = arith.muli %arg1, %c1_i32 : i32
    %1 = arith.addi %0, %arg2 : i32
    %c0_i32 = arith.constant 0 : i32
    %c0_i32_0 = arith.constant 0 : i32
    %c0_i32_1 = arith.constant 0 : i32
    return %arg0, %c0_i32, %1, %c0_i32_0 : i32, i32, i32, i32
  }
  func.func @transform_1(%arg0: i32, %arg1: i32, %arg2: i32) -> (i32, i32, i32, i32) {
    %c1_i32 = arith.constant 1 : i32
    %0 = arith.muli %arg1, %c1_i32 : i32
    %1 = arith.addi %0, %arg2 : i32
    %c0_i32 = arith.constant 0 : i32
    %c0_i32_0 = arith.constant 0 : i32
    %c0_i32_1 = arith.constant 0 : i32
    return %arg0, %c0_i32, %1, %c0_i32_0 : i32, i32, i32, i32
  }
  func.func @transform_2(%arg0: i32, %arg1: i32, %arg2: i32) -> (i32, i32, i32, i32) {
    %c0_i32 = arith.constant 0 : i32
    %c0_i32_0 = arith.constant 0 : i32
    %c0_i32_1 = arith.constant 0 : i32
    return %arg0, %arg1, %c0_i32, %c0_i32_0 : i32, i32, i32, i32
  }
}

</mosaic_0001>

<bundles_post_ra>
// kernel: dice_ce_loss.1
= control target key start
LH: loop header
LB: loop body
LE: loop exit
PB: predicated region body
PF: predicated region fallthrough
CT: control target
= control target key end

     0   :  { %s840_s9 = smov 0   ;;  %s842_s10 = smov 0   ;;  %s1235_s0 = inlined_call_operand.vmem [shape: f32[2,4,32,128], index: 0, kind: input, shape index: {}]   ;;  %s1236_s1 = inlined_call_operand.vmem [shape: s8[2,1,32,128], index: 1, kind: input, shape index: {}]   ;;  %s1237_s2 = inlined_call_operand.vmem [shape: f32[2,1,16,128], index: 2, kind: output, shape index: {}]  }
   0x1   :  { %s844_s11 = smov 0  }
   0x2 LB: > { %s31_s12 = sadd.s32 1, %s818_s10  ;;  %p705_p0 = scmp.ge.s32.totalorder %s822_s11, 1  ;;  %s822_s11 = sphi %s844_s11, %s12_s11   ;;  %s818_s10 = sphi %s842_s10, %s1239_s10   ;;  %s814_s9 = sphi %s840_s9, %s1238_s9  }
   0x3   : > { %p33_p1 = scmp.ge.s32.totalorder %s31_s12, 2  ;;  %p162_p2 = scmp.lt.s32.totalorder %s822_s11, 3 }
   0x5   : > { %s1241_s12 = smov (%p33_p1, %s31_s12), 0  ;;  %p163_p3 = pnand %p705_p0, %p162_p2 }
   0x6   : > { %p203_p4 = scmp.lt.s32.totalorder (!%p163_p3), %s814_s9, 1 }
   0x7   : > { %166 = sbr.rel (%p163_p3) target bundleno = 113 (0x71), region = 28 }
   0xc   : > { %s1243_s9 = smov (!%p203_p4, %s814_s9), 1 }
   0xd   : > { %s725_s13 = sshll.u32 %s1243_s9, 7  ;;  %s708_s17 = sshll.u32 %s1243_s9, 3 }
   0xe   : > { %s210_s16 = scalar_lea.vmem %s1235_s0, %s725_s13  ;;  %s220_s20 = scalar_lea.vmem %s1236_s1, %s708_s17 }
   0xf   : > { %v864_v0 = vld [vmem:[%s210_s16] sm:$0xff]  ;;  %v866_v1 = vld [vmem:[%s210_s16 + $0x8] sm:$0xff]  ;;  %v868_v2 = vld [vmem:[%s210_s16 + $0x10] sm:$0xff]  ;;  %s726_s21 = sshll.u32 %s1243_s9, 4 }
  0x10   : > { %v870_v3 = vld [vmem:[%s210_s16 + $0x18] sm:$0xff]  ;;  %v872_v4 = vld [vmem:[%s210_s16 + $0x20] sm:$0xff]  ;;  %v874_v5 = vld [vmem:[%s210_s16 + $0x28] sm:$0xff]  ;;  %s230_s24 = scalar_lea.vmem %s1237_s2, %s726_s21 }
  0x11   : > { %v876_v6 = vld [vmem:[%s210_s16 + $0x30] sm:$0xff]  ;;  %v878_v7 = vld [vmem:[%s210_s16 + $0x38] sm:$0xff]  ;;  %v264_v8 = vmax.f32 %v864_v0, %v872_v4  ;;  %v882_v9 = vld [vmem:[%s210_s16 + $0x40] sm:$0xff]  ;;  %v265_v12 = vmax.f32 %v866_v1, %v874_v5 }
  0x12   : > { %v884_v10 = vld [vmem:[%s210_s16 + $0x48] sm:$0xff]  ;;  %v886_v11 = vld [vmem:[%s210_s16 + $0x50] sm:$0xff]  ;;  %v266_v13 = vmax.f32 %v868_v2, %v876_v6  ;;  %v267_v14 = vmax.f32 %v870_v3, %v878_v7  ;;  %v894_v15 = vld [vmem:[%s210_s16 + $0x58] sm:$0xff] }
  0x13   : > { %v896_v16 = vld [vmem:[%s210_s16 + $0x60] sm:$0xff]  ;;  %v898_v17 = vld [vmem:[%s210_s16 + $0x68] sm:$0xff]  ;;  %v268_v18 = vmax.f32 %v264_v8, %v882_v9  ;;  %v901_v19 = vld [vmem:[%s210_s16 + $0x70] sm:$0xff]  ;;  %v269_v21 = vmax.f32 %v265_v12, %v884_v10 }
  0x14   : > { %v903_v20 = vld [vmem:[%s210_s16 + $0x78] sm:$0xff]  ;;  %v270_v22 = vmax.f32 %v266_v13, %v886_v11  ;;  %v271_v23 = vmax.f32 %v267_v14, %v894_v15  ;;  %v237_v57 = vld [vmem:[%s220_s20] sm:$0xff] }
  0x15   : > { %v909_v24 = vmax.f32 %v268_v18, %v896_v16  ;;  %v912_v25 = vmax.f32 %v269_v21, %v898_v17  ;;  %v956_v61 = vunpack.c.0.s8 %v237_v57  ;;  %v960_v63 = vunpack.c.1.s8 %v237_v57 }
  0x16   : > { %v915_v26 = vmax.f32 %v270_v22, %v901_v19  ;;  %v918_v27 = vmax.f32 %v271_v23, %v903_v20  ;;  %v971_v18 = vunpack.c.2.s8 %v237_v57  ;;  %v973_v21 = vunpack.c.3.s8 %v237_v57 }
  0x17   : > { %v276_v28 = vsub.f32 %v864_v0, %v909_v24  ;;  %v288_v29 = vsub.f32 %v872_v4, %v909_v24  ;;  %v277_v30 = vsub.f32 %v866_v1, %v912_v25  ;;  %v289_v33 = vsub.f32 %v874_v5, %v912_v25 }
  0x18   : > { %v278_v31 = vsub.f32 %v868_v2, %v915_v26  ;;  %v279_v32 = vsub.f32 %v870_v3, %v918_v27  ;;  %v290_v35 = vsub.f32 %v876_v6, %v915_v26  ;;  %v291_v39 = vsub.f32 %v878_v7, %v918_v27 }
  0x19   : > { %v280_v34 = vmul.f32 1.442695, %v276_v28  ;;  %v282_v36 = vmul.f32 1.442695, %v277_v30  ;;  %v292_v40 = vmul.f32 1.442695, %v288_v29  ;;  %v300_v41 = vsub.f32 %v882_v9, %v909_v24 }
  0x1a   : > { %v284_v37 = vmul.f32 1.442695, %v278_v31  ;;  %v286_v38 = vmul.f32 1.442695, %v279_v32  ;;  %v294_v42 = vmul.f32 1.442695, %v289_v33  ;;  %v301_v43 = vsub.f32 %v884_v10, %v912_v25 }
  0x1b   : > { %752 = vpow2.f32 %v280_v34  ;;  %v296_v44 = vmul.f32 1.442695, %v290_v35  ;;  %v302_v45 = vsub.f32 %v886_v11, %v915_v26  ;;  %v298_v46 = vmul.f32 1.442695, %v291_v39 }
  0x1c   : > { %754 = vpow2.f32 %v282_v36  ;;  %v303_v47 = vsub.f32 %v894_v15, %v918_v27  ;;  %v304_v48 = vmul.f32 1.442695, %v300_v41  ;;  %v312_v49 = vsub.f32 %v896_v16, %v909_v24 }
  0x1d   : > { %756 = vpow2.f32 %v284_v37  ;;  %v306_v50 = vmul.f32 1.442695, %v301_v43  ;;  %v313_v51 = vsub.f32 %v898_v17, %v912_v25  ;;  %v308_v52 = vmul.f32 1.442695, %v302_v45 }
  0x1e   : > { %758 = vpow2.f32 %v286_v38  ;;  %v314_v53 = vsub.f32 %v901_v19, %v915_v26  ;;  %v310_v54 = vmul.f32 1.442695, %v303_v47  ;;  %v315_v55 = vsub.f32 %v903_v20, %v918_v27 }
  0x1f   : > { %760 = vpow2.f32 %v292_v40  ;;  %v316_v56 = vmul.f32 1.442695, %v312_v49  ;;  %v318_v58 = vmul.f32 1.442695, %v313_v51  ;;  %vm352_vm0 = vcmp.eq.s32.totalorder %v956_v61, 0 }
  0x20   : > { %762 = vpow2.f32 %v294_v42  ;;  %v320_v59 = vmul.f32 1.442695, %v314_v53  ;;  %v322_v60 = vmul.f32 1.442695, %v315_v55  ;;  %vm353_vm1 = vcmp.eq.s32.totalorder %v960_v63, 0 }
  0x21   : > { %764 = vpow2.f32 %v296_v44  ;;  %v824_v22 = vmov 0.0   ;;  %vm402_vm2 = vcmp.eq.s32.totalorder %v956_v61, 1  ;;  %vm403_vm3 = vcmp.eq.s32.totalorder %v960_v63, 1 }
  0x22   : > { %766 = vpow2.f32 %v298_v46  ;;  %v384_v23 = vsel %vm352_vm0, 1.0, %v824_v22  ;;  %v385_v30 = vsel %vm353_vm1, 1.0, %v824_v22  ;;  %v434_v33 = vsel %vm402_vm2, 1.0, %v824_v22 }
  0x23   : > { %768 = vpow2.f32 %v304_v48  ;;  %v435_v34 = vsel %vm403_vm3, 1.0, %v824_v22  ;;  %vm354_vm4 = vcmp.eq.s32.totalorder %v971_v18, 0  ;;  %vm355_vm5 = vcmp.eq.s32.totalorder %v973_v21, 0 }
  0x24   : > { %770 = vpow2.f32 %v306_v50  ;;  %v388_v39 = vadd.f32 %v385_v30, %v384_v23  ;;  %v386_v42 = vsel %vm354_vm4, 1.0, %v824_v22  ;;  %vm404_vm6 = vcmp.eq.s32.totalorder %v971_v18, 1 }
  0x25   : > { %772 = vpow2.f32 %v308_v52  ;;  %v438_v43 = vadd.f32 %v435_v34, %v434_v33  ;;  %v436_v46 = vsel %vm404_vm6, 1.0, %v824_v22  ;;  %vm452_vm7 = vcmp.eq.s32.totalorder %v956_v61, 2 }
  0x26   : > { %774 = vpow2.f32 %v310_v54  ;;  %vm453_vm8 = vcmp.eq.s32.totalorder %v960_v63, 2  ;;  %v387_v49 = vsel %vm355_vm5, 1.0, %v824_v22  ;;  %v484_v50 = vsel %vm452_vm7, 1.0, %v824_v22 }
  0x27   : > { %776 = vpow2.f32 %v316_v56  ;;  %v485_v51 = vsel %vm453_vm8, 1.0, %v824_v22  ;;  %v389_v54 = vadd.f32 %v388_v39, %v386_v42  ;;  %vm405_vm9 = vcmp.eq.s32.totalorder %v973_v21, 1 }
  0x28   : > { %v958_v62 = vpop.eup %752  ;;  %778 = vpow2.f32 %v318_v58  ;;  %vm454_vm10 = vcmp.eq.s32.totalorder %v971_v18, 2  ;;  %v437_v57 = vsel %vm405_vm9, 1.0, %v824_v22  ;;  %v439_v58 = vadd.f32 %v438_v43, %v436_v46 }
  0x29   : > { %v962_v8 = vpop.eup %754  ;;  %780 = vpow2.f32 %v320_v59  ;;  %v486_v59 = vsel %vm454_vm10, 1.0, %v824_v22  ;;  %vm502_vm11 = vcmp.eq.s32.totalorder %v956_v61, 3  ;;  %vm503_vm12 = vcmp.eq.s32.totalorder %v960_v63, 3 }
  0x2a   : > { %v964_v12 = vpop.eup %756  ;;  %782 = vpow2.f32 %v322_v60  ;;  %v534_v33 = vsel %vm502_vm11, 1.0, %v824_v22  ;;  %v535_v34 = vsel %vm503_vm12, 1.0, %v824_v22  ;;  %v440_v39 = vadd.f32 %v439_v58, %v437_v57 }
  0x2b   : > { %v966_v13 = vpop.eup %758  ;;  %vm455_vm13 = vcmp.eq.s32.totalorder %v973_v21, 2  ;;  %vm504_vm14 = vcmp.eq.s32.totalorder %v971_v18, 3  ;;  %v538_v42 = vadd.f32 %v535_v34, %v534_v33  ;;  %v398_v43 = vsel %vm352_vm0, %v864_v0, 0.0 }
  0x2c   : > { %v969_v14 = vpop.eup %760  ;;  %v536_v46 = vsel %vm504_vm14, 1.0, %v824_v22  ;;  %v401_v0 = vsel %vm355_vm5, %v870_v3, 0.0  ;;  %vm505_vm15 = vcmp.eq.s32.totalorder %v973_v21, 3 }
  0x2d   : > { %v979_v28 = vpop.eup %762  ;;  %v324_v29 = vadd.f32 %v969_v14, %v958_v62  ;;  %v539_v57 = vadd.f32 %v538_v42, %v536_v46 }
  0x2e   : > { %v988_v31 = vpop.eup %764  ;;  %v325_v32 = vadd.f32 %v979_v28, %v962_v8 }
  0x2f   : > { %v998_v35 = vpop.eup %766  ;;  %v326_v36 = vadd.f32 %v988_v31, %v964_v12 }
  0x30   : > { %v1002_v37 = vpop.eup %768  ;;  %v327_v38 = vadd.f32 %v998_v35, %v966_v13 }
  0x31   : > { %v1008_v40 = vpop.eup %770  ;;  %v328_v41 = vadd.f32 %v1002_v37, %v324_v29  ;;  %v488_v29 = vadd.f32 %v485_v51, %v484_v50  ;;  %v400_v50 = vsel %vm354_vm4, %v868_v2, 0.0  ;;  %v441_v51 = vrot.slane %v440_v39, 4 }
  0x32   : > { %v1015_v44 = vpop.eup %772  ;;  %v329_v45 = vadd.f32 %v1008_v40, %v325_v32  ;;  %v537_v2 = vsel %vm505_vm15, 1.0, %v824_v22  ;;  %v450_v3 = vsel %vm404_vm6, %v876_v6, %v400_v50 }
  0x33   : > { %v1023_v47 = vpop.eup %774  ;;  %v330_v48 = vadd.f32 %v1015_v44, %v326_v36  ;;  %v1099_v58 = vadd.f32 %v441_v51, %v440_v39  ;;  %v500_v6 = vsel %vm454_vm10, %v886_v11, %v450_v3 }
  0x34   : > { %v1035_v52 = vpop.eup %776  ;;  %v331_v53 = vadd.f32 %v1023_v47, %v327_v38  ;;  %v390_v38 = vadd.f32 %v389_v54, %v387_v49  ;;  %v399_v49 = vsel %vm353_vm1, %v866_v1, 0.0 }
  0x35   : > { %v1040_v55 = vpop.eup %778  ;;  %v332_v56 = vadd.f32 %v1035_v52, %v328_v41  ;;  %v489_v41 = vadd.f32 %v488_v29, %v486_v59  ;;  %v449_v1 = vsel %vm403_vm3, %v874_v5, %v399_v49  ;;  %v540_v29 = vadd.f32 %v539_v57, %v537_v2 }
  0x36   : > { %v1049_v60 = vpop.eup %780  ;;  %v333_v23 = vadd.f32 %v1040_v55, %v329_v45  ;;  %v487_v45 = vsel %vm455_vm13, 1.0, %v824_v22  ;;  %v499_v22 = vsel %vm453_vm8, %v884_v10, %v449_v1 }
  0x37   : > { %v1054_v30 = vpop.eup %782  ;;  %v334_v32 = vadd.f32 %v1049_v60, %v330_v48  ;;  %784 = vrcp.f32 %v332_v56  ;;  %v391_v48 = vrot.slane %v390_v38, 4  ;;  %v490_v54 = vadd.f32 %v489_v41, %v487_v45 }
  0x38   : > { %v335_v36 = vadd.f32 %v1054_v30, %v331_v53  ;;  %786 = vrcp.f32 %v333_v23  ;;  %v448_v53 = vsel %vm402_vm2, %v872_v4, %v398_v43  ;;  %v451_v4 = vsel %vm405_vm9, %v878_v7, %v401_v0 }
  0x39   : > { %788 = vrcp.f32 %v334_v32  ;;  %v498_v5 = vsel %vm452_vm7, %v882_v9, %v448_v53  ;;  %v491_v59 = vrot.slane %v490_v54, 4  ;;  %v501_v9 = vsel %vm455_vm13, %v894_v15, %v451_v4 }
  0x3a   : > { %790 = vrcp.f32 %v335_v36  ;;  %v1122_v10 = vsel %vm502_vm11, %v896_v16, %v498_v5  ;;  %v1127_v11 = vsel %vm503_vm12, %v898_v17, %v499_v22  ;;  %v541_v39 = vrot.slane %v540_v29, 4 }
  0x3b   : > { %792 = vlog2.f32 %v332_v56  ;;  %v1094_v56 = vadd.f32 %v391_v48, %v390_v38  ;;  %v443_v38 = vrot.slane %v1099_v58, 2  ;;  %v1132_v15 = vadd.f32 %v491_v59, %v490_v54 }
  0x3c   : > { %794 = vlog2.f32 %v333_v23  ;;  %v1154_v46 = vsel %vm505_vm15, %v903_v20, %v501_v9  ;;  %v1164_v51 = vadd.f32 %v541_v39, %v540_v29 }
  0x3d   : > { %796 = vlog2.f32 %v334_v32  ;;  %v393_v7 = vrot.slane %v1094_v56, 2 }
  0x3e   : > { %798 = vlog2.f32 %v335_v36 }
  0x3f   : > { %v394_v21 = vadd.f32 %v393_v7, %v1094_v56 }
  0x44   : > { %v785_v33 = vpop.eup %784 }
  0x45   : > { %v787_v23 = vpop.eup %786  ;;  %v356_v34 = vmul.f32 %v785_v33, %v958_v62  ;;  %v1137_v62 = vsel %vm504_vm14, %v901_v19, %v500_v6  ;;  %v406_v42 = vmul.f32 %v785_v33, %v969_v14  ;;  %v456_v1 = vmul.f32 %v785_v33, %v1002_v37 }
  0x46   : > { %v1129_v32 = vpop.eup %788  ;;  %v357_v36 = vmul.f32 %v787_v23, %v962_v8  ;;  %v407_v8 = vmul.f32 %v787_v23, %v979_v28  ;;  %v457_v2 = vmul.f32 %v787_v23, %v1008_v40  ;;  %v506_v3 = vmul.f32 %v785_v33, %v1035_v52 }
  0x47   : > { %v1139_v41 = vpop.eup %790  ;;  %v358_v16 = vmul.f32 %v1129_v32, %v964_v12  ;;  %v370_v17 = vsel %vm352_vm0, %v356_v34, 0.0  ;;  %v408_v14 = vmul.f32 %v1129_v32, %v988_v31  ;;  %v420_v54 = vsel %vm402_vm2, %v406_v42, 0.0 }
  0x48   : > { %v359_v43 = vmul.f32 %v1139_v41, %v966_v13  ;;  %v360_v45 = vadd.f32 %v357_v36, %v356_v34  ;;  %v371_v19 = vsel %vm353_vm1, %v357_v36, 0.0  ;;  %v410_v28 = vadd.f32 %v407_v8, %v406_v42  ;;  %v793_v49 = vpop.eup %792 }
  0x49   : > { %v372_v12 = vsel %vm354_vm4, %v358_v16, 0.0  ;;  %v374_v48 = vadd.f32 %v371_v19, %v370_v17  ;;  %v409_v0 = vmul.f32 %v1139_v41, %v998_v35  ;;  %v421_v57 = vsel %vm403_vm3, %v407_v8, 0.0  ;;  %v795_v34 = vpop.eup %794 }
  0x4a   : > { %v361_v50 = vadd.f32 %v360_v45, %v358_v16  ;;  %v373_v13 = vsel %vm355_vm5, %v359_v43, 0.0  ;;  %v411_v53 = vadd.f32 %v410_v28, %v408_v14  ;;  %v341_v4 = vmul.f32 0.6931472, %v793_v49  ;;  %v797_v33 = vpop.eup %796 }
  0x4b   : > { %v375_v20 = vadd.f32 %v374_v48, %v372_v12  ;;  %v422_v59 = vsel %vm404_vm6, %v408_v14, 0.0  ;;  %v423_v29 = vsel %vm405_vm9, %v409_v0, 0.0  ;;  %v424_v6 = vadd.f32 %v421_v57, %v420_v54  ;;  %v799_v8 = vpop.eup %798 }
  0x4c   : > { %v362_v31 = vadd.f32 %v361_v50, %v359_v43  ;;  %v412_v35 = vadd.f32 %v411_v53, %v409_v0  ;;  %v458_v9 = vmul.f32 %v1129_v32, %v1015_v44  ;;  %v459_v40 = vmul.f32 %v1139_v41, %v1023_v47 }
  0x4d   : > { %v376_v5 = vadd.f32 %v375_v20, %v373_v13  ;;  %v460_v52 = vadd.f32 %v457_v2, %v456_v1  ;;  %v425_v16 = vadd.f32 %v424_v6, %v422_v59  ;;  %v470_v17 = vsel %vm452_vm7, %v456_v1, 0.0 }
  0x4e   : > { %v363_v22 = vrot.slane %v362_v31, 4  ;;  %v413_v36 = vrot.slane %v412_v35, 4  ;;  %v471_v42 = vsel %vm453_vm8, %v457_v2, 0.0  ;;  %v472_v44 = vsel %vm454_vm10, %v458_v9, 0.0 }
  0x4f   : > { %v377_v37 = vrot.slane %v376_v5, 4  ;;  %v461_v45 = vadd.f32 %v460_v52, %v458_v9  ;;  %v507_v19 = vmul.f32 %v787_v23, %v1040_v55  ;;  %v343_v12 = vmul.f32 0.6931472, %v795_v34 }
  0x50   : > { %v364_v39 = vadd.f32 %v363_v22, %v362_v31  ;;  %v414_v47 = vadd.f32 %v413_v36, %v412_v35  ;;  %v426_v48 = vadd.f32 %v425_v16, %v423_v29  ;;  %v474_v14 = vadd.f32 %v471_v42, %v470_v17 }
  0x51   : > { %v378_v43 = vadd.f32 %v377_v37, %v376_v5  ;;  %v345_v28 = vmul.f32 0.6931472, %v797_v33  ;;  %v348_v49 = vadd.f32 %v341_v4, %v909_v24  ;;  %v462_v50 = vadd.f32 %v461_v45, %v459_v40 }
  0x52   : > { %v473_v13 = vsel %vm455_vm13, %v459_v40, 0.0  ;;  %v347_v0 = vmul.f32 0.6931472, %v799_v8  ;;  %v365_v20 = vrot.slane %v364_v39, 2  ;;  %v427_v53 = vrot.slane %v426_v48, 4 }
  0x53   : > { %v475_v54 = vadd.f32 %v474_v14, %v472_v44  ;;  %v379_v57 = vrot.slane %v378_v43, 2  ;;  %v463_v31 = vrot.slane %v462_v50, 4  ;;  %v508_v55 = vmul.f32 %v1129_v32, %v1049_v60 }
  0x54   : > { %v510_v23 = vadd.f32 %v507_v19, %v506_v3  ;;  %v349_v1 = vadd.f32 %v343_v12, %v912_v25  ;;  %v415_v2 = vrot.slane %v414_v47, 2  ;;  %v428_v5 = vadd.f32 %v427_v53, %v426_v48 }
  0x55   : > { %v476_v35 = vadd.f32 %v475_v54, %v473_v13  ;;  %v350_v24 = vadd.f32 %v345_v28, %v915_v26  ;;  %v464_v4 = vadd.f32 %v463_v31, %v462_v50  ;;  %v509_v59 = vmul.f32 %v1139_v41, %v1054_v30 }
  0x56   : > { %v511_v22 = vadd.f32 %v510_v23, %v508_v55  ;;  %v429_v29 = vrot.slane %v428_v5, 2  ;;  %v520_v9 = vsel %vm502_vm11, %v506_v3, 0.0  ;;  %v521_v60 = vsel %vm503_vm12, %v507_v19, 0.0 }
  0x57   : > { %v477_v6 = vrot.slane %v476_v35, 4  ;;  %v351_v25 = vadd.f32 %v347_v0, %v918_v27  ;;  %v366_v32 = vadd.f32 %v365_v20, %v364_v39  ;;  %v380_v34 = vadd.f32 %v379_v57, %v378_v43 }
  0x58   : > { %v512_v37 = vadd.f32 %v511_v22, %v509_v59  ;;  %v416_v36 = vadd.f32 %v415_v2, %v414_v47  ;;  %v465_v26 = vrot.slane %v464_v4, 2  ;;  %v522_v30 = vsel %vm504_vm14, %v508_v55, 0.0 }
  0x59   : > { %v478_v40 = vadd.f32 %v477_v6, %v476_v35  ;;  %v430_v41 = vadd.f32 %v429_v29, %v428_v5  ;;  %v524_v33 = vadd.f32 %v521_v60, %v520_v9  ;;  %v552_v61 = vsub.f32 %v348_v49, %v1122_v10 }
  0x5a   : > { %v513_v52 = vrot.slane %v512_v37, 4  ;;  %v523_v63 = vsel %vm505_vm15, %v509_v59, 0.0  ;;  %v553_v27 = vsub.f32 %v349_v1, %v1127_v11  ;;  %v554_v39 = vsub.f32 %v350_v24, %v1137_v62 }
  0x5b   : > { %v479_v3 = vrot.slane %v478_v40, 2  ;;  %v367_v16 = vrot.slane %v366_v32, 1  ;;  %v381_v17 = vrot.slane %v380_v34, 1  ;;  %v525_v8 = vadd.f32 %v524_v33, %v522_v30 }
  0x5c   : > { %v514_v42 = vadd.f32 %v513_v52, %v512_v37  ;;  %v466_v43 = vadd.f32 %v465_v26, %v464_v4  ;;  %v555_v45 = vsub.f32 %v351_v25, %v1154_v46  ;;  %v556_v44 = vadd.f32 %v553_v27, %v552_v61 }
  0x5d   : > { %v480_v18 = vadd.f32 %v479_v3, %v478_v40  ;;  %v417_v19 = vrot.slane %v416_v36, 1  ;;  %v431_v12 = vrot.slane %v430_v41, 1  ;;  %v526_v47 = vadd.f32 %v525_v8, %v523_v63 }
  0x5e   : > { %v515_v10 = vrot.slane %v514_v42, 2  ;;  %v493_v11 = vrot.slane %v1132_v15, 2  ;;  %v557_v62 = vadd.f32 %v556_v44, %v554_v39  ;;  %v444_v48 = vadd.f32 %v443_v38, %v1099_v58 }
  0x5f   : > { %v527_v28 = vrot.slane %v526_v47, 4  ;;  %v543_v46 = vrot.slane %v1164_v51, 2  ;;  %v368_v49 = vadd.f32 %v367_v16, %v366_v32  ;;  %v467_v50 = vrot.slane %v466_v43, 1 }
  0x60   : > { %v516_v14 = vadd.f32 %v515_v10, %v514_v42  ;;  %v481_v13 = vrot.slane %v480_v18, 1  ;;  %v558_v0 = vadd.f32 %v557_v62, %v555_v45  ;;  %v382_v20 = vadd.f32 %v381_v17, %v380_v34 }
  0x61   : > { %v418_v53 = vadd.f32 %v417_v19, %v416_v36  ;;  %v432_v54 = vadd.f32 %v431_v12, %v430_v41  ;;  %v528_v57 = vadd.f32 %v527_v28, %v526_v47  ;;  %v494_v56 = vadd.f32 %v493_v11, %v1132_v15 }
  0x62   : > { %v559_v7 = vrot.slane %v558_v0, 4  ;;  %vm568_vm0 = vcmask 1040384   ;;  %v517_v31 = vrot.slane %v516_v14, 1  ;;  %v544_v58 = vadd.f32 %v543_v46, %v1164_v51 }
  0x63   : > { %v529_v55 = vrot.slane %v528_v57, 2  ;;  %vm570_vm1 = vcmask 1041408   ;;  %v395_v38 = vrot.slane %v394_v21, 1  ;;  %v468_v23 = vadd.f32 %v467_v50, %v466_v43 }
  0x64   : > { %v482_v1 = vadd.f32 %v481_v13, %v480_v18  ;;  %v560_v2 = vadd.f32 %v559_v7, %v558_v0  ;;  %v445_v5 = vrot.slane %v444_v48, 1  ;;  %v569_v24 = vsel %vm568_vm0, %v382_v20, %v432_v54 }
  0x65   : > { %v530_v35 = vadd.f32 %v529_v55, %v528_v57  ;;  %v582_v4 = vsel %vm568_vm0, %v368_v49, %v418_v53  ;;  %v495_v59 = vrot.slane %v494_v56, 1  ;;  %v518_v29 = vadd.f32 %v517_v31, %v516_v14 }
  0x66   : > { %v561_v22 = vrot.slane %v560_v2, 2  ;;  %v545_v15 = vrot.slane %v544_v58, 1  ;;  %vm572_vm2 = vcmask 1042432   ;;  %v396_v9 = vadd.f32 %v395_v38, %v394_v21 }
  0x67   : > { %v531_v6 = vrot.slane %v530_v35, 1  ;;  %v571_v51 = vsel %vm570_vm1, %v569_v24, %v482_v1  ;;  %v583_v25 = vsel %vm570_vm1, %v582_v4, %v468_v23  ;;  %v446_v32 = vadd.f32 %v445_v5, %v444_v48 }
  0x68   : > { %v562_v60 = vadd.f32 %v561_v22, %v560_v2  ;;  %vm574_vm3 = vcmask 1043456   ;;  %v496_v37 = vadd.f32 %v495_v59, %v494_v56  ;;  %vm576_vm4 = vcmask 1044480  }
  0x69   : > { %v532_v34 = vadd.f32 %v531_v6, %v530_v35  ;;  %v546_v26 = vadd.f32 %v545_v15, %v544_v58  ;;  %vm578_vm5 = vcmask 1045504   ;;  %v584_v30 = vsel %vm572_vm2, %v583_v25, %v518_v29 }
  0x6a   : > { %v563_v36 = vrot.slane %v562_v60, 1  ;;  %vm580_vm6 = vcmask 1046528  }
  0x6b   : > { %v573_v40 = vsel %vm572_vm2, %v571_v51, %v532_v34 }
  0x6c   : > { %v564_v41 = vadd.f32 %v563_v36, %v562_v60  ;;  %v575_v52 = vsel %vm574_vm3, %v573_v40, %v396_v9 }
  0x6d   : > { %v577_v33 = vsel %vm576_vm4, %v575_v52, %v446_v32 }
  0x6e   : > { %v579_v61 = vsel %vm578_vm5, %v577_v33, %v496_v37  ;;  %v585_v3 = vsel %vm574_vm3, %v584_v30, %v564_v41 }
  0x6f   : > { %v581_v63 = vsel %vm580_vm6, %v579_v61, %v546_v26  ;;  %v586_v27 = vsel %vm576_vm4, %v585_v3, 0.0 }
  0x70   : > { %589 = vst [vmem:[%s230_s24] sm:$0xff] %v581_v63  ;;  %590 = vst [vmem:[%s230_s24 + $0x8] sm:$0xff] %v586_v27 }
  0x71 PF: > { %s12_s11 = sadd.s32 1, %s822_s11   ;;  %s1238_s9 = smov %s818_s10 }
  0x72   : > { %p9_p5 = scmp.ge.s32.totalorder %s12_s11, 4   ;;  %s1239_s10 = smov %s1241_s12 }
  0x74   :  { %11 = sbr.rel (!%p9_p5) target bundleno = 2 (0x2), region = 68 }

</bundles_post_ra>
